<compile_context>
chip_gen: v7x
topology: tpu7x:2x2x1
jax: 0.10.0
libtpu: 0.0.40
codegen_flags: <defaults>
</compile_context>

<pallas_src>
import jax
import jax.numpy as jnp
from jax.experimental import pallas as pl
from jax.experimental.pallas import tpu as pltpu


def _he_dqn_kernel(x_ref, w1_ref, b1_ref, w2_ref, b2_ref, w3_ref, b3_ref, o_ref):
    # x: (TB, D) rows of concat(obs, action); all weights resident in VMEM.
    x = x_ref[...]
    h1 = jnp.dot(x, w1_ref[...], preferred_element_type=jnp.float32) + b1_ref[...]
    h1 = jnp.maximum(h1, 0.0)
    h2 = jnp.dot(h1.astype(w2_ref.dtype), w2_ref[...],
                 preferred_element_type=jnp.float32) + b2_ref[...]
    h2 = jnp.maximum(h2, 0.0)
    # Head: contract the H axis of w3 (1,H) with the H axis of h2 (TB,H) -> (1, TB).
    # This keeps the per-tile output lane-dense (full vst, no masked partial stores).
    out_row = jax.lax.dot_general(
        w3_ref[...], h2.astype(w3_ref.dtype),
        dimension_numbers=(((1,), (1,)), ((), ())),
        preferred_element_type=jnp.float32)
    o_ref[...] = (out_row + b3_ref[...]).astype(o_ref.dtype)


def _round_up(n, m):
    return ((n + m - 1) // m) * m


def he_dqn_forward(obs, action, params, *, compute_dtype=jnp.float32, block_rows=512):
    """HE_DQN forward: net(cat(obs, action, dim=2)) -> (B, S, 1)."""
    x = jnp.concatenate((obs.astype(jnp.float32), action.astype(jnp.float32)), axis=2)
    B, S, D = x.shape
    H = params["w1"].shape[1]

    n = B * S
    tb = block_rows if n >= block_rows else max(_round_up(n, 8), 8)
    n_pad = _round_up(n, tb)
    num_tiles = n_pad // tb

    x2 = x.reshape(n, D)
    if n_pad != n:
        x2 = jnp.pad(x2, ((0, n_pad - n), (0, 0)))
    x2 = x2.astype(compute_dtype)

    w1 = params["w1"].astype(compute_dtype)                 # (D, H)
    w2 = params["w2"].astype(compute_dtype)                 # (H, H)
    w3 = params["w3"].reshape(1, H).astype(compute_dtype)   # (1, H) head as a lane row
    b1 = params["b1"].reshape(1, H).astype(jnp.float32)
    b2 = params["b2"].reshape(1, H).astype(jnp.float32)
    b3 = params["b3"].reshape(1, 1).astype(jnp.float32)

    def resident(a):
        return pl.BlockSpec(a.shape, lambda i, _nd=a.ndim: (0,) * _nd)

    # Rough VMEM budget: double-buffered x/out tiles + resident weights + live
    # intermediates, with headroom.  Clamped to stay safe on v7x (64 MiB physical).
    itemsize = jnp.dtype(compute_dtype).itemsize
    est = (2 * tb * D * itemsize              # x tile, double-buffered
           + 2 * tb * 4                       # output tile, double-buffered
           + (D * H + H * H + H) * itemsize   # resident weights
           + (3 * H + 1) * 4                  # biases
           + 3 * tb * H * 4)                  # h1/h2 live f32 values
    vmem_limit = int(min(max(4 * est, 16 << 20), 32 << 20))

    out = pl.pallas_call(
        _he_dqn_kernel,
        grid=(num_tiles,),
        in_specs=[
            pl.BlockSpec((tb, D), lambda i: (i, 0)),
            resident(w1), resident(b1),
            resident(w2), resident(b2),
            resident(w3), resident(b3),
        ],
        # Lane-dense output: one (1, TB) row per batch tile; leading grid dim squeezed.
        out_specs=pl.BlockSpec((None, 1, tb), lambda i: (i, 0, 0)),
        out_shape=jax.ShapeDtypeStruct((num_tiles, 1, tb), jnp.float32),
        compiler_params=pltpu.CompilerParams(
            dimension_semantics=("parallel",),
            vmem_limit_bytes=vmem_limit,
        ),
    )(x2, w1, b1, w2, b2, w3, b3)

    return out.reshape(n_pad)[:n].reshape(B, S, 1)


def init_params(key, obs_size, action_dim, hidden_size):
    """PyTorch-default-style uniform init; weights stored transposed (in, out)."""
    d = obs_size + action_dim
    k1, k2, k3, k4, k5, k6 = jax.random.split(key, 6)
    s1 = 1.0 / jnp.sqrt(jnp.float32(d))
    s2 = 1.0 / jnp.sqrt(jnp.float32(hidden_size))
    return {
        "w1": jax.random.uniform(k1, (d, hidden_size), jnp.float32, -s1, s1),
        "b1": jax.random.uniform(k2, (hidden_size,), jnp.float32, -s1, s1),
        "w2": jax.random.uniform(k3, (hidden_size, hidden_size), jnp.float32, -s2, s2),
        "b2": jax.random.uniform(k4, (hidden_size,), jnp.float32, -s2, s2),
        "w3": jax.random.uniform(k5, (hidden_size, 1), jnp.float32, -s2, s2),
        "b3": jax.random.uniform(k6, (1,), jnp.float32, -s2, s2),
    }


def _reference(obs, action, p):
    x = jnp.concatenate((obs, action), axis=2).astype(jnp.float32)
    h1 = jnp.maximum(x @ p["w1"] + p["b1"], 0.0)
    h2 = jnp.maximum(h1 @ p["w2"] + p["b2"], 0.0)
    return h2 @ p["w3"] + p["b3"]


if __name__ == "__main__":
    key = jax.random.PRNGKey(0)
    ko, ka, kp = jax.random.split(key, 3)

    batch, seq, obs_size, action_dim, hidden_size = 2, 8, 16, 4, 32
    obs = jax.random.normal(ko, (batch, seq, obs_size), jnp.float32)
    action = jax.random.normal(ka, (batch, seq, action_dim), jnp.float32)
    params = init_params(kp, obs_size, action_dim, hidden_size)

    out = he_dqn_forward(obs, action, params)
    out = jax.block_until_ready(out)

    ref = _reference(obs, action, params)
    assert out.shape == (batch, seq, 1), out.shape
    assert jnp.allclose(out, ref, atol=1e-4, rtol=1e-4)

    print("KERNEL_OK")
</pallas_src>

<mosaic_0001>
module attributes {stable_mosaic.version = 11 : i64} {
  func.func @_he_dqn_kernel(%arg0: i32, %arg1: memref<16x20xf32, #tpu.memory_space<vmem>>, %arg2: memref<20x32xf32, #tpu.memory_space<vmem>>, %arg3: memref<1x32xf32, #tpu.memory_space<vmem>>, %arg4: memref<32x32xf32, #tpu.memory_space<vmem>>, %arg5: memref<1x32xf32, #tpu.memory_space<vmem>>, %arg6: memref<1x32xf32, #tpu.memory_space<vmem>>, %arg7: memref<1x1xf32, #tpu.memory_space<vmem>>, %arg8: memref<1x1x16xf32, #tpu.memory_space<vmem>>) attributes {dimension_semantics = [#tpu.dimension_semantics<parallel>], iteration_bounds = array<i64: 1>, scalar_prefetch = 0 : i64, scratch_operands = 0 : i64, tpu.core_type = #tpu.core_type<tc>, window_params = [{transform_indices = @transform_0, window_bounds = array<i64: 16, 20>}, {pipeline_mode = #tpu.pipeline_mode<synchronous>, transform_indices = @transform_1, window_bounds = array<i64: 20, 32>}, {pipeline_mode = #tpu.pipeline_mode<synchronous>, transform_indices = @transform_2, window_bounds = array<i64: 1, 32>}, {pipeline_mode = #tpu.pipeline_mode<synchronous>, transform_indices = @transform_3, window_bounds = array<i64: 32, 32>}, {pipeline_mode = #tpu.pipeline_mode<synchronous>, transform_indices = @transform_4, window_bounds = array<i64: 1, 32>}, {pipeline_mode = #tpu.pipeline_mode<synchronous>, transform_indices = @transform_5, window_bounds = array<i64: 1, 32>}, {pipeline_mode = #tpu.pipeline_mode<synchronous>, transform_indices = @transform_6, window_bounds = array<i64: 1, 1>}, {transform_indices = @transform_7, window_bounds = array<i64: 1, 1, 16>}]} {
    %c0 = arith.constant 0 : index
    %c0_0 = arith.constant 0 : index
    %0 = vector.load %arg1[%c0, %c0_0] : memref<16x20xf32, #tpu.memory_space<vmem>>, vector<16x20xf32>
    %c0_1 = arith.constant 0 : index
    %c0_2 = arith.constant 0 : index
    %1 = vector.load %arg2[%c0_1, %c0_2] : memref<20x32xf32, #tpu.memory_space<vmem>>, vector<20x32xf32>
    %cst = arith.constant dense<0.000000e+00> : vector<16x32xf32>
    %2 = tpu.matmul %0, %1, %cst {dimension_numbers = #tpu.dot_dimension_numbers<[1], [0], [0], [1], [0, 0, 1, 1], [], []>} : vector<16x20xf32>, vector<20x32xf32>, vector<16x32xf32> -> vector<16x32xf32>
    %c0_3 = arith.constant 0 : index
    %c0_4 = arith.constant 0 : index
    %3 = vector.load %arg3[%c0_3, %c0_4] : memref<1x32xf32, #tpu.memory_space<vmem>>, vector<1x32xf32>
    %4 = vector.broadcast %3 : vector<1x32xf32> to vector<16x32xf32>
    %5 = arith.addf %2, %4 : vector<16x32xf32>
    %cst_5 = arith.constant 0.000000e+00 : f32
    %6 = vector.broadcast %cst_5 : f32 to vector<16x32xf32>
    %7 = arith.maximumf %5, %6 : vector<16x32xf32>
    %c0_6 = arith.constant 0 : index
    %c0_7 = arith.constant 0 : index
    %8 = vector.load %arg4[%c0_6, %c0_7] : memref<32x32xf32, #tpu.memory_space<vmem>>, vector<32x32xf32>
    %cst_8 = arith.constant dense<0.000000e+00> : vector<16x32xf32>
    %9 = tpu.matmul %7, %8, %cst_8 {dimension_numbers = #tpu.dot_dimension_numbers<[1], [0], [0], [1], [0, 0, 1, 1], [], []>} : vector<16x32xf32>, vector<32x32xf32>, vector<16x32xf32> -> vector<16x32xf32>
    %c0_9 = arith.constant 0 : index
    %c0_10 = arith.constant 0 : index
    %10 = vector.load %arg5[%c0_9, %c0_10] : memref<1x32xf32, #tpu.memory_space<vmem>>, vector<1x32xf32>
    %11 = vector.broadcast %10 : vector<1x32xf32> to vector<16x32xf32>
    %12 = arith.addf %9, %11 : vector<16x32xf32>
    %cst_11 = arith.constant 0.000000e+00 : f32
    %13 = vector.broadcast %cst_11 : f32 to vector<16x32xf32>
    %14 = arith.maximumf %12, %13 : vector<16x32xf32>
    %c0_12 = arith.constant 0 : index
    %c0_13 = arith.constant 0 : index
    %15 = vector.load %arg6[%c0_12, %c0_13] : memref<1x32xf32, #tpu.memory_space<vmem>>, vector<1x32xf32>
    %cst_14 = arith.constant dense<0.000000e+00> : vector<1x16xf32>
    %16 = tpu.matmul %15, %14, %cst_14 {dimension_numbers = #tpu.dot_dimension_numbers<[1], [1], [0], [0], [0, 0, 1, 0], [], []>} : vector<1x32xf32>, vector<16x32xf32>, vector<1x16xf32> -> vector<1x16xf32>
    %c0_15 = arith.constant 0 : index
    %c0_16 = arith.constant 0 : index
    %17 = vector.load %arg7[%c0_15, %c0_16] : memref<1x1xf32, #tpu.memory_space<vmem>>, vector<1x1xf32>
    %18 = vector.broadcast %17 : vector<1x1xf32> to vector<1x16xf32>
    %19 = arith.addf %16, %18 : vector<1x16xf32>
    %c0_17 = arith.constant 0 : index
    %c0_18 = arith.constant 0 : index
    %c0_19 = arith.constant 0 : index
    %20 = vector.load %arg8[%c0_17, %c0_18, %c0_19] : memref<1x1x16xf32, #tpu.memory_space<vmem>>, vector<1x1x16xf32>
    %21 = vector.shape_cast %20 : vector<1x1x16xf32> to vector<1x16xf32>
    %22 = vector.shape_cast %19 : vector<1x16xf32> to vector<1x1x16xf32>
    tpu.vector_store %arg8[%c0_17, %c0_18, %c0_19], %22 {strides = array<i32>} : memref<1x1x16xf32, #tpu.memory_space<vmem>>, vector<1x1x16xf32>,
    return
  }
  func.func @transform_0(%arg0: i32) -> (i32, i32) {
    %c0_i32 = arith.constant 0 : i32
    %c0_i32_0 = arith.constant 0 : i32
    return %arg0, %c0_i32 : i32, i32
  }
  func.func @transform_1(%arg0: i32) -> (i32, i32) {
    %c0_i32 = arith.constant 0 : i32
    %c0_i32_0 = arith.constant 0 : i32
    %c0_i32_1 = arith.constant 0 : i32
    return %c0_i32, %c0_i32_0 : i32, i32
  }
  func.func @transform_2(%arg0: i32) -> (i32, i32) {
    %c0_i32 = arith.constant 0 : i32
    %c0_i32_0 = arith.constant 0 : i32
    %c0_i32_1 = arith.constant 0 : i32
    return %c0_i32, %c0_i32_0 : i32, i32
  }
  func.func @transform_3(%arg0: i32) -> (i32, i32) {
    %c0_i32 = arith.constant 0 : i32
    %c0_i32_0 = arith.constant 0 : i32
    %c0_i32_1 = arith.constant 0 : i32
    return %c0_i32, %c0_i32_0 : i32, i32
  }
  func.func @transform_4(%arg0: i32) -> (i32, i32) {
    %c0_i32 = arith.constant 0 : i32
    %c0_i32_0 = arith.constant 0 : i32
    %c0_i32_1 = arith.constant 0 : i32
    return %c0_i32, %c0_i32_0 : i32, i32
  }
  func.func @transform_5(%arg0: i32) -> (i32, i32) {
    %c0_i32 = arith.constant 0 : i32
    %c0_i32_0 = arith.constant 0 : i32
    %c0_i32_1 = arith.constant 0 : i32
    return %c0_i32, %c0_i32_0 : i32, i32
  }
  func.func @transform_6(%arg0: i32) -> (i32, i32) {
    %c0_i32 = arith.constant 0 : i32
    %c0_i32_0 = arith.constant 0 : i32
    %c0_i32_1 = arith.constant 0 : i32
    return %c0_i32, %c0_i32_0 : i32, i32
  }
  func.func @transform_7(%arg0: i32) -> (i32, i32, i32) {
    %c0_i32 = arith.constant 0 : i32
    %c0_i32_0 = arith.constant 0 : i32
    %c0_i32_1 = arith.constant 0 : i32
    return %arg0, %c0_i32, %c0_i32_0 : i32, i32, i32
  }
}

</mosaic_0001>

<bundles_post_ra>
// kernel: tpu_custom_call.1
= control target key start
LH: loop header
LB: loop body
LE: loop exit
PB: predicated region body
PF: predicated region fallthrough
CT: control target
= control target key end

     0   :  { %s678_s0 = inlined_call_operand.hbm [shape: f32[16,20], index: 0, kind: input, shape index: {}]   ;;  %s679_s1 = inlined_call_operand.hbm [shape: f32[20,32], index: 1, kind: input, shape index: {}]   ;;  %s680_s2 = inlined_call_operand.vmem [shape: f32[1,32], index: 2, kind: input, shape index: {}]   ;;  %s681_s3 = inlined_call_operand.hbm [shape: f32[32,32], index: 3, kind: input, shape index: {}]   ;;  %s682_s4 = inlined_call_operand.vmem [shape: f32[1,32], index: 4, kind: input, shape index: {}]   ;;  %s683_s5 = inlined_call_operand.vmem [shape: f32[1,32], index: 5, kind: input, shape index: {}]   ;;  %s684_s6 = inlined_call_operand.<no memory space> [shape: f32[1,1], index: 6, kind: input, shape index: {}]   ;;  %s685_s7 = inlined_call_operand.hbm [shape: f32[1,1,16], index: 7, kind: output, shape index: {}]  }
   0x1   :  { %v12_v0 = vstv %s684_s6 }
   0x2   :  { %13 = vst [vmem:[#allocation2] sm:$0x1] %v12_v0 }
   0x3   :  { %14 = vsyncpa [#allocation4], 0 }
   0x4   :  { %15 = vsyncpa [#allocation7], 0 }
   0x5   :  { %16 = vsyncpa [#allocation5], 0  ;;  %s545_s26 = smov [#allocation6]   ;;  %s546_s28 = smov [#allocation3]  }
   0x6   :  { %s34_s27 = sshll.u32 %s545_s26, 4  ;;  %s22_s29 = sshll.u32 %s546_s28, 4  ;;  %s35_s27 = int_to_ptr.vmem [resolvable:$true] %s34_s27  ;;  %s598_s29 = int_to_ptr.vmem [resolvable:$true] %s22_s29 }
   0x7   :  { %s451_s9 = scalar_lea.hbm %s679_s1, 384 }
   0x8   :  { %p452_p0 = scmp.ne.s32.totalorder %s679_s1, %s451_s9  ;;  %p455_p1 = scmp.lt.u32.totalorder %s451_s9, %s679_s1 }
   0xa   :  { %p457_p2 = pnand %p455_p1, %p452_p0 }
   0xc   :  { %460 = shalt.err (!%p457_p2)
}
   0xd   :  { %s461_s13 = scalar_lea.vmem %s35_s27, 384  ;;  %p466_p4 = scmp.lt.s32.totalorder %s35_s27, %s35_s27 }
   0xe   :  { %p462_p3 = scmp.ne.s32.totalorder %s35_s27, %s461_s13  ;;  %p467_p5 = scmp.lt.s32.totalorder %s461_s13, %s461_s13 }
  0x10   :  { %p468_p6 = por %p467_p5, %p466_p4 }
  0x12   :  { %p469_p7 = pnand %p468_p6, %p462_p3 }
  0x14   :  { %472 = shalt.err (!%p469_p7)
}
  0x15   :  { %s547_s14 = smov 128   ;;  %s548_s15 = smov 8  }
  0x16   :  { %40 = dma.hbm_to_vmem [thread:$0]  %s679_s1, 384, %s35_s27, [#allocation7], %s547_s14, %s547_s14, %s548_s15  }
  0x17   :  { %s473_s20 = scalar_lea.hbm %s678_s0, 256 }
  0x18   :  { %p474_p8 = scmp.ne.s32.totalorder %s678_s0, %s473_s20  ;;  %p477_p9 = scmp.lt.u32.totalorder %s473_s20, %s678_s0 }
  0x1a   :  { %p479_p10 = pnand %p477_p9, %p474_p8 }
  0x1c   :  { %482 = shalt.err (!%p479_p10)
}
  0x1d   :  { %s483_s25 = scalar_lea.vmem %s598_s29, 256  ;;  %p488_p12 = scmp.lt.s32.totalorder %s598_s29, %s598_s29 }
  0x1e   :  { %p484_p11 = scmp.ne.s32.totalorder %s598_s29, %s483_s25  ;;  %p489_p13 = scmp.lt.s32.totalorder %s483_s25, %s483_s25 }
  0x20   :  { %p490_p0 = por %p489_p13, %p488_p12 }
  0x22   :  { %p491_p1 = pnand %p490_p0, %p484_p11 }
  0x24   :  { %494 = shalt.err (!%p491_p1)
}
  0x25   :  { %28 = dma.hbm_to_vmem [thread:$0]  %s678_s0, 256, %s598_s29, [#allocation4], %s547_s14, %s547_s14, %s548_s15  }
  0x26   :  { %s549_s27 = smov [#allocation8]   ;;  %s495_s9 = scalar_lea.hbm %s681_s3, 512 }
  0x27   :  { %s48_s28 = sshll.u32 %s549_s27, 4  ;;  %p496_p2 = scmp.ne.s32.totalorder %s681_s3, %s495_s9  ;;  %s49_s28 = int_to_ptr.vmem [resolvable:$true] %s48_s28 }
  0x28   :  { %p499_p3 = scmp.lt.u32.totalorder %s495_s9, %s681_s3 }
  0x2a   :  { %p501_p4 = pnand %p499_p3, %p496_p2 }
  0x2c   :  { %504 = shalt.err (!%p501_p4)
}
  0x2d   :  { %s505_s13 = scalar_lea.vmem %s49_s28, 512  ;;  %p510_p6 = scmp.lt.s32.totalorder %s49_s28, %s49_s28 }
  0x2e   :  { %p506_p5 = scmp.ne.s32.totalorder %s49_s28, %s505_s13  ;;  %p511_p7 = scmp.lt.s32.totalorder %s505_s13, %s505_s13 }
  0x30   :  { %p512_p8 = por %p511_p7, %p510_p6 }
  0x32   :  { %p513_p9 = pnand %p512_p8, %p506_p5 }
  0x34   :  { %516 = shalt.err (!%p513_p9)
}
  0x35   :  { %54 = dma.hbm_to_vmem [thread:$0]  %s681_s3, 512, %s49_s28, [#allocation7], %s547_s14, %s547_s14, %s548_s15  }
  0x36   :  { %539 = dma.done.wait [#allocation4], 256  }
  0x37   :  { %540 = vsyncadd [#allocation4], 4294967040 }
  0x38   :  { %541 = dma.done.wait [#allocation7], 896  }
  0x39   :  { %542 = vsyncadd [#allocation7], 4294966400  ;;  %vm82_vm0 = vcmask 162816   ;;  %v72_v1 = vld [vmem:[#allocation6] sm:$0xff]  ;;  %v73_v2 = vld [vmem:[#allocation6 + $0x8] sm:$0xff]  ;;  %vm89_vm1 = vcmask 1043456   ;;  %v272_v33 = vlaneseq }
  0x3a   :  { %v424_v3 = vpack.c.bf16 %v73_v2, %v72_v1  ;;  %v70_v4 = vld [vmem:[#allocation3] sm:$0xff]  ;;  %v170_v5 = vld [vmem:[#allocation8] sm:$0xff]  ;;  %v171_v7 = vld [vmem:[#allocation8 + $0x8] sm:$0xff]  ;;  %vm181_vm2 = vcmask 261120   ;;  %v550_v20 = vmov 0.0|0.0   ;;  %vm551_vm3 = vmmov 0  }
  0x3b   :  { %v74_v6 = vld [vmem:[#allocation6 + $0x10] sm:$0xf]  ;;  %403 = vmatprep.mubr.msk.f32.mxu0 %vm82_vm0, %v70_v4  ;;  %v428_v8 = vpack.c.bf16 %v171_v7, %v170_v5  ;;  %v71_v9 = vld [vmem:[#allocation3 + $0x8] sm:$0xff]  ;;  %v172_v10 = vld [vmem:[#allocation8 + $0x10] sm:$0xff]  ;;  %v552_v21 = vmov 0.0   ;;  %v553_v23 = vmov 0  }
  0x3c   :  { %425 = vmatprep.subr.bf16.mxu0 %v424_v3  ;;  %v173_v11 = vld [vmem:[#allocation8 + $0x18] sm:$0xff]  ;;  %v373_v13 = vld [vmem:[%s680_s2] ss:$0 sm:$0xff]  ;;  %450 = vset.pattern.permute.xlu0 %v553_v23  ;;  %vm438_vm4 = vmpackc.low %vm181_vm2, %vm181_vm2  ;;  %v273_v34 = vshrl.u32 %v272_v33, 7  ;;  %vm355_vm5 = vcmask 122880  }
  0x3d   :  { %427 = vmatpush3.bf16.msra.mxu0 %v424_v3  ;;  %429 = vmatprep.subr.bf16.mxu1 %v428_v8  ;;  %v432_v12 = vpack.c.bf16 %v173_v11, %v172_v10  ;;  %v266_v22 = vld [vmem:[#allocation2] sm:$0x1] }
  0x3e   :  { %401 = vmatprep.subr.msk.mxu0 %vm89_vm1, %v74_v6  ;;  %431 = vmatpush3.bf16.msra.mxu1 %v428_v8  ;;  %v377_v24 = vld [vmem:[%s682_s4] ss:$0 sm:$0xff]  ;;  %v274_v35 = vsub.s32 0, %v273_v34  ;;  %s554_s4 = smov [#allocation9]  }
  0x3f   :  { %433 = vmatprep.subr.bf16.mxu1 %v432_v12  ;;  %269 = vperm.xlu0 %450, %v266_v22   ;;  %v265_v32 = vld [vmem:[%s683_s5] sm:$0x1]  ;;  %s363_s18 = sshll.u32 %s554_s4, 4  ;;  %s364_s18 = int_to_ptr.vmem [resolvable:$true] %s363_s18 }
  0x40   :  { %s517_s19 = scalar_lea.vmem %s364_s18, 16  ;;  %s521_s20 = scalar_lea.vmem %s364_s18, 32 }
  0x41   :  { %402 = vmatpush3.msk.msra.mxu0 %vm89_vm1, %v74_v6  ;;  %p518_p10 = scmp.ne.s32.totalorder %s364_s18, %s517_s19  ;;  %p522_p11 = scmp.lt.s32.totalorder %s364_s18, %s364_s18 }
  0x42   :  { %404 = vmatmul.mubr.msk.f32.vlgmr.msra.gmra.mrb[0].mxu0 %vm82_vm0, %v71_v9  ;;  %435 = vmatpush3.bf16.msra.mxu1 %v432_v12  ;;  %p523_p12 = scmp.lt.s32.totalorder %s521_s20, %s517_s19 }
  0x43   :  { %436 = vmatprep.subr.bf16.mxu0 %v550_v20  ;;  %421 = vmatprep.mubr.msk.f32.mxu0 %vm551_vm3, %v552_v21 }
  0x44   :  { %p524_p13 = por %p523_p12, %p522_p11 }
  0x46   :  { %p525_p0 = pnand %p524_p13, %p518_p10 }
  0xbe   :  { %v270_v36 = vpop.permute.xlu0 %269 }
  0xbf   :  { %v275_v37 = vrot.slane %v270_v36, %v274_v35 }
 0x115   :  { %v405_v14 = vpop.f32.mrb[0].mxu0 }
 0x116   :  { %v165_v15 = vadd.f32 %v405_v14, %v373_v13  ;;  %v159_v16 = vpop.f32.mrb[1].mxu0 }
 0x117   :  { %v160_v17 = vadd.f32 %v373_v13, %v159_v16 }
 0x118   :  { %v169_v19 = vmax.f32 %v165_v15, 0.0 }
 0x119   :  { %v168_v18 = vmax.f32 %v160_v17, 0.0 }
 0x11b   :  { %414 = vmatprep.mubr.msk.f32.mxu1 %vm181_vm2, %v168_v18 }
 0x11c   :  { %415 = vmatmul.mubr.msk.f32.vlgmr.msra.gmra.mrb[0].mxu1 %vm181_vm2, %v169_v19 }
 0x1ef   :  { %v416_v25 = vpop.f32.mrb[0].mxu1 }
 0x1f0   :  { %v260_v26 = vadd.f32 %v416_v25, %v377_v24  ;;  %v254_v27 = vpop.f32.mrb[1].mxu1 }
 0x1f1   :  { %v255_v28 = vadd.f32 %v377_v24, %v254_v27 }
 0x1f2   :  { %v264_v29 = vmax.f32 %v260_v26, 0.0 }
 0x1f3   :  { %v263_v30 = vmax.f32 %v255_v28, 0.0 }
 0x1f5   :  { %v437_v31 = vpack.c.bf16 %v264_v29, %v263_v30 }
 0x1f7   :  { %439 = vmatpush3.bf16.xpose.msk.msra.mxu0 %vm438_vm4, %v437_v31 }
 0x1fe   :  { %422 = vmatmul.mubr.msk.f32.vlgmr.msra.gmra.mrb[2].mxu0 %vm181_vm2, %v265_v32 }
 0x2d1   :  { %v351_v38 = vpop.f32.mrb[2].mxu0 }
 0x2d2   :  { %v352_v39 = vadd.f32 %v351_v38, %v275_v37  ;;  %v423_v40 = vpop.f32.mrb[3].mxu0 }
 0x2d4   :  { %356 = vst.msk [vmem:[#allocation9] sm:$0x1] %vm355_vm5, %v352_v39 }
 0x2d5   :  { %528 = shalt.err (!%p525_p0)
}
 0x2d6   :  { %s529_s22 = scalar_lea.hbm %s685_s7, 16 }
 0x2d7   :  { %p530_p1 = scmp.ne.s32.totalorder %s685_s7, %s529_s22  ;;  %p533_p2 = scmp.lt.u32.totalorder %s529_s22, %s685_s7 }
 0x2d9   :  { %p535_p3 = pnand %p533_p2, %p530_p1 }
 0x2db   :  { %538 = shalt.err (!%p535_p3)
}
 0x2dc   :  { %366 = dma.vmem_to_hbm [thread:$0]  %s364_s18, 16, %s685_s7, [#allocation5]  }
 0x2dd   :  { %543 = dma.done.wait [#allocation5], 16  }
 0x2de   :  { %544 = vsyncadd [#allocation5], 4294967280 }
 0x2df   :  { %370 = vsyncpa [#allocation4], 1 }
 0x2e0   :  { %371 = vsyncpa [#allocation7], 1 }
 0x2e1   :  { %372 = vsyncpa [#allocation5], 1 }

</bundles_post_ra>
